<compile_context>
chip_gen: v7x
topology: tpu7x:2x2x1
jax: 0.10.0
libtpu: 0.0.40
codegen_flags: <defaults>
</compile_context>

<pallas_src>
import functools

import jax
import jax.numpy as jnp
from jax import lax
from jax.experimental import pallas as pl
from jax.experimental.pallas import tpu as pltpu


def gatedgcn_fused_kernel(
    h0_ref, e0_ref, s_ref, d_ref,
    wn_ref, bn_ref, wc_ref, bc_ref,
    hsc_ref, hsh_ref, esc_ref, esh_ref,
    h_out_ref, e_out_ref,
):
    f32 = jnp.float32
    bf16 = jnp.bfloat16
    li = pl.program_id(0)
    H = h0_ref.shape[1]

    # Layer 0: seed the resident output blocks with the embeddings (they act as the
    # running h/e state across the whole layer grid).
    @pl.when(li == 0)
    def _():
        h_out_ref[...] = h0_ref[...]
        e_out_ref[...] = e0_ref[...]

    h = h_out_ref[...]          # (N, H) f32 running state
    e = e_out_ref[...]          # (E, H) f32 running state
    S = s_ref[...]              # (E, N) bf16 one-hot src incidence
    D = d_ref[...]              # (E, N) bf16 one-hot dst incidence

    h_bf = h.astype(bf16)
    e_bf = e.astype(bf16)

    # Fused node transform: [Ah | Bh | Dh | Eh] = h @ [Wa|Wb|Wd|We]  -> (N, 4H), 128 lanes.
    abde = jnp.dot(h_bf, wn_ref[...], preferred_element_type=f32) + bn_ref[...]
    Ah = abde[:, 0 * H:1 * H]
    Bh = abde[:, 1 * H:2 * H]
    Dh = abde[:, 2 * H:3 * H]
    Eh = abde[:, 3 * H:4 * H]

    # Edge transform.
    Ce = jnp.dot(e_bf, wc_ref[...], preferred_element_type=f32) + bc_ref[...]

    # Fused source gather: S @ [Dh | Bh] -> (E, 2H); destination gather: D @ Eh.
    db = jnp.concatenate([Dh, Bh], axis=-1).astype(bf16)                  # (N, 2H)
    gsrc = jnp.dot(S, db, preferred_element_type=f32)                     # (E, 2H)
    Dh_src = gsrc[:, :H]
    Bh_src = gsrc[:, H:]
    Eh_dst = jnp.dot(D, Eh.astype(bf16), preferred_element_type=f32)      # (E, H)

    # Edge update + gate.
    e_new = Ce + Dh_src + Eh_dst
    sigma = jax.nn.sigmoid(e_new)

    # Fused scatter-add over destination nodes: contract the edge axis of D directly
    # (== D^T @ [sigma*Bh_src | sigma]) -> (N, 2H), no explicit transposed input.
    msg = jnp.concatenate([sigma * Bh_src, sigma], axis=-1).astype(bf16)  # (E, 2H)
    numden = lax.dot_general(
        D, msg,
        dimension_numbers=(((0,), (0,)), ((), ())),
        preferred_element_type=f32)                                       # (N, 2H)
    num = numden[:, :H]
    den = numden[:, H:]

    h_new = Ah + num * pl.reciprocal(den + 1e-6, approx=True)

    # BatchNorm1d eval-mode affine + ReLU + residual (f32 epilogue).  Dropout is a no-op.
    h_new = jnp.maximum(h_new * hsc_ref[...] + hsh_ref[...], 0.0)
    e_bnr = jnp.maximum(e_new * esc_ref[...] + esh_ref[...], 0.0)

    h_out_ref[...] = h + h_new
    e_out_ref[...] = e + e_bnr


def run_gatedgcn(h0, e0, S, D, stacked):
    N, H = h0.shape
    E = e0.shape[0]
    L = stacked["Wnode"].shape[0]

    fixed2 = lambda l: (0, 0)
    per_layer = lambda l: (l, 0, 0)

    grid_spec = pltpu.PrefetchScalarGridSpec(
        num_scalar_prefetch=0,
        grid=(L,),
        in_specs=[
            pl.BlockSpec((N, H), fixed2),               # h0  (loaded once, block fixed)
            pl.BlockSpec((E, H), fixed2),               # e0
            pl.BlockSpec((E, N), fixed2),               # S  (bf16)
            pl.BlockSpec((E, N), fixed2),               # D  (bf16)
            pl.BlockSpec((None, H, 4 * H), per_layer),  # Wnode stack (L, H, 4H) bf16
            pl.BlockSpec((None, 1, 4 * H), per_layer),  # bnode stack (L, 1, 4H) f32
            pl.BlockSpec((None, H, H), per_layer),      # Wc stack
            pl.BlockSpec((None, 1, H), per_layer),      # bc stack
            pl.BlockSpec((None, 1, H), per_layer),      # h_scale
            pl.BlockSpec((None, 1, H), per_layer),      # h_shift
            pl.BlockSpec((None, 1, H), per_layer),      # e_scale
            pl.BlockSpec((None, 1, H), per_layer),      # e_shift
        ],
        out_specs=(
            pl.BlockSpec((N, H), fixed2),               # resident accumulator across layers
            pl.BlockSpec((E, H), fixed2),
        ),
    )
    return pl.pallas_call(
        gatedgcn_fused_kernel,
        out_shape=(
            jax.ShapeDtypeStruct((N, H), jnp.float32),
            jax.ShapeDtypeStruct((E, H), jnp.float32),
        ),
        grid_spec=grid_spec,
        compiler_params=pltpu.CompilerParams(
            dimension_semantics=("arbitrary",),          # layers are sequential
            vmem_limit_bytes=32 * 1024 * 1024,
        ),
    )(h0, e0, S, D,
      stacked["Wnode"], stacked["bnode"], stacked["Wc"], stacked["bc"],
      stacked["h_scale"], stacked["h_shift"], stacked["e_scale"], stacked["e_shift"])


def init_params(key, in_dim, in_dim_edge, hid_dim, n_layers):
    keys = jax.random.split(key, 2 + 10 * n_layers)
    # nn.Embedding default init: N(0, 1)
    h_emb = jax.random.normal(keys[0], (in_dim, hid_dim), jnp.float32)
    e_emb = jax.random.normal(keys[1], (in_dim_edge, hid_dim), jnp.float32)

    k = 1.0 / jnp.sqrt(hid_dim)
    # BatchNorm1d eval-mode affine, default stats (gamma=1, beta=0, mean=0, var=1, eps=1e-5).
    bn_scale = jnp.full((hid_dim,), 1.0 / jnp.sqrt(1.0 + 1e-5), jnp.float32)
    bn_shift = jnp.zeros((hid_dim,), jnp.float32)

    wn, bnb, wc, bc = [], [], [], []
    hs, hsh, es, esh = [], [], [], []
    for li in range(n_layers):
        kk = keys[2 + 10 * li: 2 + 10 * (li + 1)]
        W, b = {}, {}
        for i, name in enumerate("ABCDE"):
            W[name] = jax.random.uniform(kk[i], (hid_dim, hid_dim), jnp.float32, -k, k)
            b[name] = jax.random.uniform(kk[5 + i], (hid_dim,), jnp.float32, -k, k)
        # Fused node weights: [Wa | Wb | Wd | We]  -> (H, 4H)
        wn.append(jnp.concatenate([W["A"], W["B"], W["D"], W["E"]], axis=1))
        bnb.append(jnp.concatenate([b["A"], b["B"], b["D"], b["E"]], axis=0))
        wc.append(W["C"])
        bc.append(b["C"])
        hs.append(bn_scale); hsh.append(bn_shift)
        es.append(bn_scale); esh.append(bn_shift)

    stacked = {
        "Wnode": jnp.stack(wn).astype(jnp.bfloat16),    # (L, H, 4H)
        "bnode": jnp.stack(bnb)[:, None, :],            # (L, 1, 4H) f32
        "Wc": jnp.stack(wc).astype(jnp.bfloat16),       # (L, H, H)
        "bc": jnp.stack(bc)[:, None, :],                # (L, 1, H)  f32
        "h_scale": jnp.stack(hs)[:, None, :],
        "h_shift": jnp.stack(hsh)[:, None, :],
        "e_scale": jnp.stack(es)[:, None, :],
        "e_shift": jnp.stack(esh)[:, None, :],
    }
    return {"h_emb": h_emb, "e_emb": e_emb, "stacked": stacked}


@functools.partial(jax.jit, static_argnames=("num_nodes",))
def gatedgcn_forward(params, node_id, edge_type, src, dst, num_nodes):
    # Glue: embedding lookups + one-hot incidence construction (graph/parameter setup).
    h0 = params["h_emb"][node_id]                                   # (N, H) f32
    e0 = params["e_emb"][edge_type]                                 # (E, H) f32
    S = jax.nn.one_hot(src, num_nodes, dtype=jnp.bfloat16)          # (E, N)
    D = jax.nn.one_hot(dst, num_nodes, dtype=jnp.bfloat16)          # (E, N)
    h_out, _e_out = run_gatedgcn(h0, e0, S, D, params["stacked"])
    return h_out


if __name__ == "__main__":
    IN_DIM = 8          # node-id vocabulary (h_embedding rows)
    IN_DIM_EDGE = 4     # edge-type vocabulary (e_embedding rows)
    HID_DIM = 32
    N_LAYERS = 2
    N_NODES = 16
    N_EXTRA_EDGES = 16

    key = jax.random.PRNGKey(0)
    k_param, k_nid, k_et, k_src, k_dst = jax.random.split(key, 5)

    params = init_params(k_param, IN_DIM, IN_DIM_EDGE, HID_DIM, N_LAYERS)

    node_id = jax.random.randint(k_nid, (N_NODES,), 0, IN_DIM, jnp.int32)

    # Graph: a ring (guarantees in-degree >= 1 for every node, matching DGL semantics of
    # the dense formulation) plus some random extra edges.
    ring_src = jnp.arange(N_NODES, dtype=jnp.int32)
    ring_dst = (ring_src + 1) % N_NODES
    extra_src = jax.random.randint(k_src, (N_EXTRA_EDGES,), 0, N_NODES, jnp.int32)
    extra_dst = jax.random.randint(k_dst, (N_EXTRA_EDGES,), 0, N_NODES, jnp.int32)
    src = jnp.concatenate([ring_src, extra_src])
    dst = jnp.concatenate([ring_dst, extra_dst])
    n_edges = src.shape[0]
    edge_type = jax.random.randint(k_et, (n_edges,), 0, IN_DIM_EDGE, jnp.int32)

    h_out = gatedgcn_forward(params, node_id, edge_type, src, dst, N_NODES)
    jax.block_until_ready(h_out)
    assert h_out.shape == (N_NODES, HID_DIM)
    assert bool(jnp.all(jnp.isfinite(h_out)))
    print("KERNEL_OK")
</pallas_src>

<mosaic_0001>
module attributes {stable_mosaic.version = 11 : i64} {
  func.func @gatedgcn_fused_kernel(%arg0: i32, %arg1: memref<16x32xf32, #tpu.memory_space<vmem>>, %arg2: memref<32x32xf32, #tpu.memory_space<vmem>>, %arg3: memref<32x16xbf16, #tpu.memory_space<vmem>>, %arg4: memref<32x16xbf16, #tpu.memory_space<vmem>>, %arg5: memref<1x32x128xbf16, #tpu.memory_space<vmem>>, %arg6: memref<1x1x128xf32, #tpu.memory_space<vmem>>, %arg7: memref<1x32x32xbf16, #tpu.memory_space<vmem>>, %arg8: memref<1x1x32xf32, #tpu.memory_space<vmem>>, %arg9: memref<1x1x32xf32, #tpu.memory_space<vmem>>, %arg10: memref<1x1x32xf32, #tpu.memory_space<vmem>>, %arg11: memref<1x1x32xf32, #tpu.memory_space<vmem>>, %arg12: memref<1x1x32xf32, #tpu.memory_space<vmem>>, %arg13: memref<16x32xf32, #tpu.memory_space<vmem>>, %arg14: memref<32x32xf32, #tpu.memory_space<vmem>>) attributes {dimension_semantics = [#tpu.dimension_semantics<arbitrary>], iteration_bounds = array<i64: 2>, scalar_prefetch = 0 : i64, scratch_operands = 0 : i64, tpu.core_type = #tpu.core_type<tc>, window_params = [{pipeline_mode = #tpu.pipeline_mode<synchronous>, transform_indices = @transform_0, window_bounds = array<i64: 16, 32>}, {pipeline_mode = #tpu.pipeline_mode<synchronous>, transform_indices = @transform_1, window_bounds = array<i64: 32, 32>}, {pipeline_mode = #tpu.pipeline_mode<synchronous>, transform_indices = @transform_2, window_bounds = array<i64: 32, 16>}, {pipeline_mode = #tpu.pipeline_mode<synchronous>, transform_indices = @transform_3, window_bounds = array<i64: 32, 16>}, {transform_indices = @transform_4, window_bounds = array<i64: 1, 32, 128>}, {transform_indices = @transform_5, window_bounds = array<i64: 1, 1, 128>}, {transform_indices = @transform_6, window_bounds = array<i64: 1, 32, 32>}, {transform_indices = @transform_7, window_bounds = array<i64: 1, 1, 32>}, {transform_indices = @transform_8, window_bounds = array<i64: 1, 1, 32>}, {transform_indices = @transform_9, window_bounds = array<i64: 1, 1, 32>}, {transform_indices = @transform_10, window_bounds = array<i64: 1, 1, 32>}, {transform_indices = @transform_11, window_bounds = array<i64: 1, 1, 32>}, {pipeline_mode = #tpu.pipeline_mode<synchronous>, transform_indices = @transform_12, window_bounds = array<i64: 16, 32>}, {pipeline_mode = #tpu.pipeline_mode<synchronous>, transform_indices = @transform_13, window_bounds = array<i64: 32, 32>}]} {
    %c0_i32 = arith.constant 0 : i32
    %0 = arith.cmpi eq, %arg0, %c0_i32 : i32
    %1 = arith.extui %0 : i1 to i32
    %c0_i32_0 = arith.constant 0 : i32
    %2 = arith.cmpi ne, %1, %c0_i32_0 : i32
    scf.if %2 {
      %c0_44 = arith.constant 0 : index
      %c0_45 = arith.constant 0 : index
      %76 = vector.load %arg1[%c0_44, %c0_45] : memref<16x32xf32, #tpu.memory_space<vmem>>, vector<16x32xf32>
      %c0_46 = arith.constant 0 : index
      %c0_47 = arith.constant 0 : index
      %77 = vector.load %arg13[%c0_46, %c0_47] : memref<16x32xf32, #tpu.memory_space<vmem>>, vector<16x32xf32>
      tpu.vector_store %arg13[%c0_46, %c0_47], %76 {strides = array<i32>} : memref<16x32xf32, #tpu.memory_space<vmem>>, vector<16x32xf32>,
      %c0_48 = arith.constant 0 : index
      %c0_49 = arith.constant 0 : index
      %78 = vector.load %arg2[%c0_48, %c0_49] : memref<32x32xf32, #tpu.memory_space<vmem>>, vector<32x32xf32>
      %c0_50 = arith.constant 0 : index
      %c0_51 = arith.constant 0 : index
      %79 = vector.load %arg14[%c0_50, %c0_51] : memref<32x32xf32, #tpu.memory_space<vmem>>, vector<32x32xf32>
      tpu.vector_store %arg14[%c0_50, %c0_51], %78 {strides = array<i32>} : memref<32x32xf32, #tpu.memory_space<vmem>>, vector<32x32xf32>,
    } else {
    }
    %c0 = arith.constant 0 : index
    %c0_1 = arith.constant 0 : index
    %3 = vector.load %arg13[%c0, %c0_1] : memref<16x32xf32, #tpu.memory_space<vmem>>, vector<16x32xf32>
    %c0_2 = arith.constant 0 : index
    %c0_3 = arith.constant 0 : index
    %4 = vector.load %arg14[%c0_2, %c0_3] : memref<32x32xf32, #tpu.memory_space<vmem>>, vector<32x32xf32>
    %c0_4 = arith.constant 0 : index
    %c0_5 = arith.constant 0 : index
    %5 = vector.load %arg3[%c0_4, %c0_5] : memref<32x16xbf16, #tpu.memory_space<vmem>>, vector<32x16xbf16>
    %c0_6 = arith.constant 0 : index
    %c0_7 = arith.constant 0 : index
    %6 = vector.load %arg4[%c0_6, %c0_7] : memref<32x16xbf16, #tpu.memory_space<vmem>>, vector<32x16xbf16>
    %7 = arith.truncf %3 : vector<16x32xf32> to vector<16x32xbf16>
    %8 = arith.truncf %4 : vector<32x32xf32> to vector<32x32xbf16>
    %c0_8 = arith.constant 0 : index
    %c0_9 = arith.constant 0 : index
    %c0_10 = arith.constant 0 : index
    %9 = vector.load %arg5[%c0_8, %c0_9, %c0_10] : memref<1x32x128xbf16, #tpu.memory_space<vmem>>, vector<1x32x128xbf16>
    %10 = vector.shape_cast %9 : vector<1x32x128xbf16> to vector<32x128xbf16>
    %cst = arith.constant dense<0.000000e+00> : vector<16x128xf32>
    %11 = tpu.matmul %7, %10, %cst {dimension_numbers = #tpu.dot_dimension_numbers<[1], [0], [0], [1], [0, 0, 1, 1], [], []>} : vector<16x32xbf16>, vector<32x128xbf16>, vector<16x128xf32> -> vector<16x128xf32>
    %c0_11 = arith.constant 0 : index
    %c0_12 = arith.constant 0 : index
    %c0_13 = arith.constant 0 : index
    %12 = vector.load %arg6[%c0_11, %c0_12, %c0_13] : memref<1x1x128xf32, #tpu.memory_space<vmem>>, vector<1x1x128xf32>
    %13 = vector.shape_cast %12 : vector<1x1x128xf32> to vector<1x128xf32>
    %14 = vector.broadcast %13 : vector<1x128xf32> to vector<16x128xf32>
    %15 = arith.addf %11, %14 : vector<16x128xf32>
    %16 = vector.extract_strided_slice %15 {offsets = [0, 0], sizes = [16, 32], strides = [1, 1]} : vector<16x128xf32> to vector<16x32xf32>
    %17 = vector.extract_strided_slice %15 {offsets = [0, 32], sizes = [16, 32], strides = [1, 1]} : vector<16x128xf32> to vector<16x32xf32>
    %18 = vector.extract_strided_slice %15 {offsets = [0, 64], sizes = [16, 32], strides = [1, 1]} : vector<16x128xf32> to vector<16x32xf32>
    %19 = vector.extract_strided_slice %15 {offsets = [0, 96], sizes = [16, 32], strides = [1, 1]} : vector<16x128xf32> to vector<16x32xf32>
    %c0_14 = arith.constant 0 : index
    %c0_15 = arith.constant 0 : index
    %c0_16 = arith.constant 0 : index
    %20 = vector.load %arg7[%c0_14, %c0_15, %c0_16] : memref<1x32x32xbf16, #tpu.memory_space<vmem>>, vector<1x32x32xbf16>
    %21 = vector.shape_cast %20 : vector<1x32x32xbf16> to vector<32x32xbf16>
    %cst_17 = arith.constant dense<0.000000e+00> : vector<32x32xf32>
    %22 = tpu.matmul %8, %21, %cst_17 {dimension_numbers = #tpu.dot_dimension_numbers<[1], [0], [0], [1], [0, 0, 1, 1], [], []>} : vector<32x32xbf16>, vector<32x32xbf16>, vector<32x32xf32> -> vector<32x32xf32>
    %c0_18 = arith.constant 0 : index
    %c0_19 = arith.constant 0 : index
    %c0_20 = arith.constant 0 : index
    %23 = vector.load %arg8[%c0_18, %c0_19, %c0_20] : memref<1x1x32xf32, #tpu.memory_space<vmem>>, vector<1x1x32xf32>
    %24 = vector.shape_cast %23 : vector<1x1x32xf32> to vector<1x32xf32>
    %25 = vector.broadcast %24 : vector<1x32xf32> to vector<32x32xf32>
    %26 = arith.addf %22, %25 : vector<32x32xf32>
    %27 = tpu.concatenate %18, %17 in 1 : vector<16x32xf32>, vector<16x32xf32> -> vector<16x64xf32>
    %28 = arith.truncf %27 : vector<16x64xf32> to vector<16x64xbf16>
    %cst_21 = arith.constant dense<0.000000e+00> : vector<32x64xf32>
    %29 = tpu.matmul %5, %28, %cst_21 {dimension_numbers = #tpu.dot_dimension_numbers<[1], [0], [0], [1], [0, 0, 1, 1], [], []>} : vector<32x16xbf16>, vector<16x64xbf16>, vector<32x64xf32> -> vector<32x64xf32>
    %30 = vector.extract_strided_slice %29 {offsets = [0, 0], sizes = [32, 32], strides = [1, 1]} : vector<32x64xf32> to vector<32x32xf32>
    %31 = vector.extract_strided_slice %29 {offsets = [0, 32], sizes = [32, 32], strides = [1, 1]} : vector<32x64xf32> to vector<32x32xf32>
    %32 = arith.truncf %19 : vector<16x32xf32> to vector<16x32xbf16>
    %cst_22 = arith.constant dense<0.000000e+00> : vector<32x32xf32>
    %33 = tpu.matmul %6, %32, %cst_22 {dimension_numbers = #tpu.dot_dimension_numbers<[1], [0], [0], [1], [0, 0, 1, 1], [], []>} : vector<32x16xbf16>, vector<16x32xbf16>, vector<32x32xf32> -> vector<32x32xf32>
    %34 = arith.addf %26, %30 : vector<32x32xf32>
    %35 = arith.addf %34, %33 : vector<32x32xf32>
    %36 = arith.negf %35 : vector<32x32xf32>
    %37 = math.exp %36 : vector<32x32xf32>
    %cst_23 = arith.constant 1.000000e+00 : f32
    %38 = vector.broadcast %cst_23 : f32 to vector<32x32xf32>
    %39 = arith.addf %38, %37 : vector<32x32xf32>
    %40 = arith.divf %38, %39 : vector<32x32xf32>
    %41 = arith.mulf %40, %31 : vector<32x32xf32>
    %42 = tpu.concatenate %41, %40 in 1 : vector<32x32xf32>, vector<32x32xf32> -> vector<32x64xf32>
    %43 = arith.truncf %42 : vector<32x64xf32> to vector<32x64xbf16>
    %cst_24 = arith.constant dense<0.000000e+00> : vector<16x64xf32>
    %44 = tpu.matmul %6, %43, %cst_24 {dimension_numbers = #tpu.dot_dimension_numbers<[0], [0], [1], [1], [0, 1, 1, 1], [], []>} : vector<32x16xbf16>, vector<32x64xbf16>, vector<16x64xf32> -> vector<16x64xf32>
    %45 = vector.extract_strided_slice %44 {offsets = [0, 0], sizes = [16, 32], strides = [1, 1]} : vector<16x64xf32> to vector<16x32xf32>
    %46 = vector.extract_strided_slice %44 {offsets = [0, 32], sizes = [16, 32], strides = [1, 1]} : vector<16x64xf32> to vector<16x32xf32>
    %cst_25 = arith.constant 9.99999997E-7 : f32
    %47 = vector.broadcast %cst_25 : f32 to vector<16x32xf32>
    %48 = arith.addf %46, %47 : vector<16x32xf32>
    %49 = tpu.reciprocal %48 {approx = true} : vector<16x32xf32> -> vector<16x32xf32>
    %50 = arith.mulf %45, %49 : vector<16x32xf32>
    %51 = arith.addf %16, %50 : vector<16x32xf32>
    %c0_26 = arith.constant 0 : index
    %c0_27 = arith.constant 0 : index
    %c0_28 = arith.constant 0 : index
    %52 = vector.load %arg9[%c0_26, %c0_27, %c0_28] : memref<1x1x32xf32, #tpu.memory_space<vmem>>, vector<1x1x32xf32>
    %53 = vector.shape_cast %52 : vector<1x1x32xf32> to vector<1x32xf32>
    %54 = vector.broadcast %53 : vector<1x32xf32> to vector<16x32xf32>
    %55 = arith.mulf %51, %54 : vector<16x32xf32>
    %c0_29 = arith.constant 0 : index
    %c0_30 = arith.constant 0 : index
    %c0_31 = arith.constant 0 : index
    %56 = vector.load %arg10[%c0_29, %c0_30, %c0_31] : memref<1x1x32xf32, #tpu.memory_space<vmem>>, vector<1x1x32xf32>
    %57 = vector.shape_cast %56 : vector<1x1x32xf32> to vector<1x32xf32>
    %58 = vector.broadcast %57 : vector<1x32xf32> to vector<16x32xf32>
    %59 = arith.addf %55, %58 : vector<16x32xf32>
    %cst_32 = arith.constant 0.000000e+00 : f32
    %60 = vector.broadcast %cst_32 : f32 to vector<16x32xf32>
    %61 = arith.maximumf %59, %60 : vector<16x32xf32>
    %c0_33 = arith.constant 0 : index
    %c0_34 = arith.constant 0 : index
    %c0_35 = arith.constant 0 : index
    %62 = vector.load %arg11[%c0_33, %c0_34, %c0_35] : memref<1x1x32xf32, #tpu.memory_space<vmem>>, vector<1x1x32xf32>
    %63 = vector.shape_cast %62 : vector<1x1x32xf32> to vector<1x32xf32>
    %64 = vector.broadcast %63 : vector<1x32xf32> to vector<32x32xf32>
    %65 = arith.mulf %35, %64 : vector<32x32xf32>
    %c0_36 = arith.constant 0 : index
    %c0_37 = arith.constant 0 : index
    %c0_38 = arith.constant 0 : index
    %66 = vector.load %arg12[%c0_36, %c0_37, %c0_38] : memref<1x1x32xf32, #tpu.memory_space<vmem>>, vector<1x1x32xf32>
    %67 = vector.shape_cast %66 : vector<1x1x32xf32> to vector<1x32xf32>
    %68 = vector.broadcast %67 : vector<1x32xf32> to vector<32x32xf32>
    %69 = arith.addf %65, %68 : vector<32x32xf32>
    %cst_39 = arith.constant 0.000000e+00 : f32
    %70 = vector.broadcast %cst_39 : f32 to vector<32x32xf32>
    %71 = arith.maximumf %69, %70 : vector<32x32xf32>
    %72 = arith.addf %3, %61 : vector<16x32xf32>
    %c0_40 = arith.constant 0 : index
    %c0_41 = arith.constant 0 : index
    %73 = vector.load %arg13[%c0_40, %c0_41] : memref<16x32xf32, #tpu.memory_space<vmem>>, vector<16x32xf32>
    tpu.vector_store %arg13[%c0_40, %c0_41], %72 {strides = array<i32>} : memref<16x32xf32, #tpu.memory_space<vmem>>, vector<16x32xf32>,
    %74 = arith.addf %4, %71 : vector<32x32xf32>
    %c0_42 = arith.constant 0 : index
    %c0_43 = arith.constant 0 : index
    %75 = vector.load %arg14[%c0_42, %c0_43] : memref<32x32xf32, #tpu.memory_space<vmem>>, vector<32x32xf32>
    tpu.vector_store %arg14[%c0_42, %c0_43], %74 {strides = array<i32>} : memref<32x32xf32, #tpu.memory_space<vmem>>, vector<32x32xf32>,
    return
  }
  func.func @transform_0(%arg0: i32) -> (i32, i32) {
    %c0_i32 = arith.constant 0 : i32
    %c0_i32_0 = arith.constant 0 : i32
    %c0_i32_1 = arith.constant 0 : i32
    return %c0_i32, %c0_i32_0 : i32, i32
  }
  func.func @transform_1(%arg0: i32) -> (i32, i32) {
    %c0_i32 = arith.constant 0 : i32
    %c0_i32_0 = arith.constant 0 : i32
    %c0_i32_1 = arith.constant 0 : i32
    return %c0_i32, %c0_i32_0 : i32, i32
  }
  func.func @transform_2(%arg0: i32) -> (i32, i32) {
    %c0_i32 = arith.constant 0 : i32
    %c0_i32_0 = arith.constant 0 : i32
    %c0_i32_1 = arith.constant 0 : i32
    return %c0_i32, %c0_i32_0 : i32, i32
  }
  func.func @transform_3(%arg0: i32) -> (i32, i32) {
    %c0_i32 = arith.constant 0 : i32
    %c0_i32_0 = arith.constant 0 : i32
    %c0_i32_1 = arith.constant 0 : i32
    return %c0_i32, %c0_i32_0 : i32, i32
  }
  func.func @transform_4(%arg0: i32) -> (i32, i32, i32) {
    %c0_i32 = arith.constant 0 : i32
    %c0_i32_0 = arith.constant 0 : i32
    %c0_i32_1 = arith.constant 0 : i32
    return %arg0, %c0_i32, %c0_i32_0 : i32, i32, i32
  }
  func.func @transform_5(%arg0: i32) -> (i32, i32, i32) {
    %c0_i32 = arith.constant 0 : i32
    %c0_i32_0 = arith.constant 0 : i32
    %c0_i32_1 = arith.constant 0 : i32
    return %arg0, %c0_i32, %c0_i32_0 : i32, i32, i32
  }
  func.func @transform_6(%arg0: i32) -> (i32, i32, i32) {
    %c0_i32 = arith.constant 0 : i32
    %c0_i32_0 = arith.constant 0 : i32
    %c0_i32_1 = arith.constant 0 : i32
    return %arg0, %c0_i32, %c0_i32_0 : i32, i32, i32
  }
  func.func @transform_7(%arg0: i32) -> (i32, i32, i32) {
    %c0_i32 = arith.constant 0 : i32
    %c0_i32_0 = arith.constant 0 : i32
    %c0_i32_1 = arith.constant 0 : i32
    return %arg0, %c0_i32, %c0_i32_0 : i32, i32, i32
  }
  func.func @transform_8(%arg0: i32) -> (i32, i32, i32) {
    %c0_i32 = arith.constant 0 : i32
    %c0_i32_0 = arith.constant 0 : i32
    %c0_i32_1 = arith.constant 0 : i32
    return %arg0, %c0_i32, %c0_i32_0 : i32, i32, i32
  }
  func.func @transform_9(%arg0: i32) -> (i32, i32, i32) {
    %c0_i32 = arith.constant 0 : i32
    %c0_i32_0 = arith.constant 0 : i32
    %c0_i32_1 = arith.constant 0 : i32
    return %arg0, %c0_i32, %c0_i32_0 : i32, i32, i32
  }
  func.func @transform_10(%arg0: i32) -> (i32, i32, i32) {
    %c0_i32 = arith.constant 0 : i32
    %c0_i32_0 = arith.constant 0 : i32
    %c0_i32_1 = arith.constant 0 : i32
    return %arg0, %c0_i32, %c0_i32_0 : i32, i32, i32
  }
  func.func @transform_11(%arg0: i32) -> (i32, i32, i32) {
    %c0_i32 = arith.constant 0 : i32
    %c0_i32_0 = arith.constant 0 : i32
    %c0_i32_1 = arith.constant 0 : i32
    return %arg0, %c0_i32, %c0_i32_0 : i32, i32, i32
  }
  func.func @transform_12(%arg0: i32) -> (i32, i32) {
    %c0_i32 = arith.constant 0 : i32
    %c0_i32_0 = arith.constant 0 : i32
    %c0_i32_1 = arith.constant 0 : i32
    return %c0_i32, %c0_i32_0 : i32, i32
  }
  func.func @transform_13(%arg0: i32) -> (i32, i32) {
    %c0_i32 = arith.constant 0 : i32
    %c0_i32_0 = arith.constant 0 : i32
    %c0_i32_1 = arith.constant 0 : i32
    return %c0_i32, %c0_i32_0 : i32, i32
  }
}

</mosaic_0001>

<bundles_post_ra>
// kernel: gatedgcn_forward.1
= control target key start
LH: loop header
LB: loop body
LE: loop exit
PB: predicated region body
PF: predicated region fallthrough
CT: control target
= control target key end

     0   :  { %s1778_s0 = inlined_call_operand.vmem [shape: f32[16,32], index: 0, kind: input, shape index: {}]   ;;  %s1779_s1 = inlined_call_operand.vmem [shape: f32[32,32], index: 1, kind: input, shape index: {}]   ;;  %s1780_s2 = inlined_call_operand.vmem [shape: bf16[32,16], index: 2, kind: input, shape index: {}]   ;;  %s1781_s3 = inlined_call_operand.vmem [shape: bf16[32,16], index: 3, kind: input, shape index: {}]   ;;  %s1782_s4 = inlined_call_operand.vmem [shape: bf16[2,32,128], index: 4, kind: input, shape index: {}]   ;;  %s1783_s5 = inlined_call_operand.vmem [shape: f32[2,1,128], index: 5, kind: input, shape index: {}]   ;;  %s1784_s6 = inlined_call_operand.vmem [shape: bf16[2,32,32], index: 6, kind: input, shape index: {}]   ;;  %s1785_s7 = inlined_call_operand.vmem [shape: f32[2,1,32], index: 7, kind: input, shape index: {}]   ;;  %s1786_s8 = inlined_call_operand.vmem [shape: f32[2,1,32], index: 8, kind: input, shape index: {}]   ;;  %s1787_s9 = inlined_call_operand.vmem [shape: f32[2,1,32], index: 9, kind: input, shape index: {}]   ;;  %s1788_s10 = inlined_call_operand.vmem [shape: f32[2,1,32], index: 10, kind: input, shape index: {}]   ;;  %s1789_s11 = inlined_call_operand.vmem [shape: f32[2,1,32], index: 11, kind: input, shape index: {}]   ;;  %s1790_s12 = inlined_call_operand.hbm [shape: f32[16,32], index: 12, kind: output, shape index: {0}]   ;;  %s1791_s13 = inlined_call_operand.hbm [shape: f32[32,32], index: 13, kind: output, shape index: {1}]  }
   0x1   :  { %1795 = sst [smem:[#allocation9_spill]] %s1782_s4 }
   0x2   :  { %1796 = sst [smem:[#allocation10_spill]] %s1790_s12 }
   0x3   :  { %1797 = sst [smem:[#allocation11_spill]] %s1791_s13 }
   0x4   :  { %19 = vsyncpa [#allocation3], 0 }
   0x5   :  { %20 = vsyncpa [#allocation5], 0  ;;  %s1533_s25 = smov 0  }
   0x6 LB: > { %1798 = sst [smem:[#allocation8_spill]] %s1452_s25  ;;  %s1539_s26 = sadd.s32 4294967295, %s1452_s25   ;;  %s1452_s25 = sphi %s1533_s25, %s26_s25  }
   0x7   : > { %p1209_p0 = scmp.ge.s32.totalorder %s1452_s25, 1  ;;  %p440_p1 = scmp.lt.s32.totalorder %s1452_s25, 3 }
   0x9   : > { %p441_p2 = pnand %p1209_p0, %p440_p1 }
   0xa   : > { %p502_p3 = scmp.lt.s32.totalorder (!%p441_p2), %s1539_s26, 1  ;;  %s1799_s4 = sld [smem:[#allocation9_spill]] (!%p441_p2) }
   0xb   : > { %444 = sbr.rel (%p441_p2) target bundleno = 1136 (0x470), region = 68  ;;  %p1214_p4 = scmp.ne.s32.totalorder (!%p441_p2), %s1539_s26, 0 }
  0x12   : > { %s1545_s27 = scalar_select %p502_p3, %s1539_s26, 1 }
  0x13   : > { %534 = sbr.rel (%p1214_p4) target bundleno = 26 (0x1a), region = 72  ;;  %v535_v0 = vld [vmem:[%s1778_s0] sm:$0xff] (!%p1214_p4)  ;;  %vm537_vm0 = vcmask (!%p1214_p4), 261120   ;;  %v536_v1 = vld [vmem:[%s1778_s0 + $0x8] sm:$0xff] (!%p1214_p4)  ;;  %v542_v4 = vld [vmem:[%s1779_s1 + $0x10] sm:$0xff] (!%p1214_p4) }
  0x14   : > { %s1247_s28 = sshll.u32 %s1545_s27, 4  ;;  %s517_s23 = scalar_lea.vmem %s1785_s7, %s1545_s27  ;;  %v540_v2 = vld [vmem:[%s1779_s1] sm:$0xff] (!%p1214_p4)  ;;  %538 = vst.msk [vmem:[#allocation2] sm:$0xff] (!%p1214_p4), %vm537_vm0, %v535_v0  ;;  %539 = vst.msk [vmem:[#allocation2 + $0x8] sm:$0xff] (!%p1214_p4), %vm537_vm0, %v536_v1  ;;  %v541_v3 = vld [vmem:[%s1779_s1 + $0x8] sm:$0xff] (!%p1214_p4) }
  0x15   : > { %s506_s17 = scalar_lea.vmem %s1799_s4, %s1247_s28  ;;  %s1558_s20 = scalar_lea.vmem %s1784_s6, %s1247_s28  ;;  %544 = vst.msk [vmem:[#allocation4] sm:$0xff] (!%p1214_p4), %vm537_vm0, %v540_v2  ;;  %v543_v5 = vld [vmem:[%s1779_s1 + $0x18] sm:$0xff] (!%p1214_p4)  ;;  %545 = vst.msk [vmem:[#allocation4 + $0x8] sm:$0xff] (!%p1214_p4), %vm537_vm0, %v541_v3 }
  0x16   : > { %s520_s12 = scalar_lea.vmem %s1786_s8, %s1545_s27  ;;  %s523_s30 = scalar_lea.vmem %s1787_s9, %s1545_s27  ;;  %546 = vst.msk [vmem:[#allocation4 + $0x10] sm:$0xff] (!%p1214_p4), %vm537_vm0, %v542_v4  ;;  %547 = vst.msk [vmem:[#allocation4 + $0x18] sm:$0xff] (!%p1214_p4), %vm537_vm0, %v543_v5 }
  0x17   : > { %s526_s16 = scalar_lea.vmem %s1788_s10, %s1545_s27  ;;  %s529_s28 = scalar_lea.vmem %s1789_s11, %s1545_s27 }
  0x1a PF: > { %v1358_v6 = vld [vmem:[%s506_s17] sm:$0xff]   ;;  %v1454_v7 = vmov 0.0   ;;  %v1359_v8 = vld [vmem:[%s506_s17 + $0x8] sm:$0xff]   ;;  %vm1455_vm1 = vmmov 0   ;;  %vm588_vm2 = vcmask 261120   ;;  %s1800_s22 = scalar_lea.vmem %s1783_s5, %s1545_s27  ;;  %vm732_vm3 = vcmask 130048  }
  0x1b   : > { %1265 = vmatprep.subr.bf16.mxu0 %v1454_v7  ;;  %1269 = vmatprep.mubr.msk.bf16.mxu0 %vm1455_vm1, %v1454_v7  ;;  %v1602_v9 = vld [vmem:[#allocation2] sm:$0xff]  ;;  %v1604_v10 = vld [vmem:[#allocation2 + $0x8] sm:$0xff]  ;;  %s1456_s4 = smov 64   ;;  %s1457_s14 = smov 32  }
  0x1c   : > { %1266 = vmatpush3.bf16.msra.mxu0 %v1358_v6  ;;  %v562_v11 = vpack.c.bf16 %v1604_v10, %v1602_v9  ;;  %v1360_v12 = vld [vmem:[%s1558_s20] sm:$0xff]   ;;  %v1361_v13 = vld [vmem:[%s1558_s20 + $0x8] sm:$0xff]   ;;  %v1612_v14 = vld [vmem:[#allocation4] sm:$0xff]  ;;  %p1321_p5 = scmp.eq.s32.totalorder %s1539_s26, 1 }
  0x1d   : > { %1267 = vmatprep.subr.bf16.mxu0 %v1454_v7  ;;  %v1614_v15 = vld [vmem:[#allocation4 + $0x8] sm:$0xff]  ;;  %1273 = vmatprep.subr.bf16.mxu1 %v1360_v12  ;;  %v1618_v17 = vld [vmem:[#allocation4 + $0x10] sm:$0xff]  ;;  %v1620_v18 = vld [vmem:[#allocation4 + $0x18] sm:$0xff] }
  0x1e   : > { %v563_v16 = vpack.c.bf16 %v1614_v15, %v1612_v14  ;;  %1274 = vmatpush3.bf16.msra.mxu1 %v1360_v12  ;;  %v564_v19 = vpack.c.bf16 %v1620_v18, %v1618_v17  ;;  %v1629_v20 = vld [vmem:[%s1781_s3] sm:$0xff]   ;;  %v1658_v38 = vld [vmem:[%s1781_s3 + $0x8] sm:$0xff]  }
  0x1f   : > { %1275 = vmatprep.subr.bf16.mxu1 %v1361_v13  ;;  %v1215_v21 = vld [vmem:[%s1800_s22] ss:$0 sm:$0xff]  ;;  %v1365_v39 = vld [vmem:[%s1780_s2 + $0x8] sm:$0xff]   ;;  %s1458_s22 = smov 96  }
  0x20   : > { %1268 = vmatpush3.bf16.msra.mxu0 %v1359_v8  ;;  %1277 = vmatprep.mubr.msk.bf16.mxu1 %vm588_vm2, %v563_v16  ;;  %v1363_v23 = vld [vmem:[%s1780_s2] sm:$0xff]  }
  0x21   : > { %v1219_v40 = vld [vmem:[%s517_s23] ss:$0 sm:$0xff] }
  0x22   : > { %1276 = vmatpush3.bf16.msra.mxu1 %v1361_v13  ;;  %v1239_v47 = vld [vmem:[%s526_s16] ss:$0 sm:$0xff]  ;;  %s1459_s16 = smov [#allocation4]  }
  0x23   : > { %1270 = vmatmul.mubr.msk.bf16.vlgmr.msra.gmra.mrb[0].mxu0 %vm588_vm2, %v562_v11  ;;  %v1240_v54 = vld [vmem:[%s529_s28] ss:$0 sm:$0xff]  ;;  %s1087_s28 = sshll.u32 %s1459_s16, 4  ;;  %s1088_s28 = int_to_ptr.vmem [resolvable:$true] %s1087_s28 }
  0x24   : > { %1283 = vmatprep.mubr.msk.bf16.mxu0 %vm732_vm3, %v1363_v23  ;;  %s1386_s24 = scalar_lea.vmem %s1088_s28, 512  ;;  %p1393_p9 = scmp.lt.s32.totalorder %s1088_s28, %s1088_s28 }
  0x25   : > { %1278 = vmatmul.mubr.msk.bf16.vlgmr.msra.gmra.mrb[0].mxu1 %vm588_vm2, %v564_v19  ;;  %p1387_p6 = scmp.ne.s32.totalorder %s1088_s28, %s1386_s24  ;;  %p1394_p10 = scmp.lt.s32.totalorder %s1386_s24, %s1386_s24 }
  0x26   : > { %1289 = vmatprep.mubr.msk.bf16.mxu1 %vm732_vm3, %v1629_v20 }
  0x27   : > { %p1388_p7 = pnand %p1387_p6, %p1321_p5  ;;  %p1395_p11 = por %p1394_p10, %p1393_p9 }
  0x29   : > { %p1389_p8 = pneg %p1388_p7 }
  0x2b   : > { %p1396_p12 = pnand %p1395_p11, %p1389_p8 }
  0xf6   : > { %v626_v22 = vpop.f32.mrb[0].mxu0 }
  0xf7   : > { %v1271_v24 = vpop.f32.mrb[1].mxu0  ;;  %v1642_v26 = vadd.f32 %v1215_v21, %v626_v22 }
  0xf8   : > { %v629_v25 = vpop.f32.mrb[2].mxu0 }
  0xf9   : > { %v1644_v27 = vadd.f32 %v1215_v21, %v629_v25  ;;  %v1272_v28 = vpop.f32.mrb[3].mxu0 }
  0xfb   : > { %v1343_v29 = vpack.i.bf16 %v1644_v27, %v1642_v26  ;;  %v788_v30 = vpack.c.bf16 %v1644_v27, %v1642_v26 }
  0xfd   : > { %1344 = vrot.lane.b32.xlu0 %v1343_v29, %s1456_s4 }
 0x101   : > { %800 = vrot.lane.b32.xlu0 %v788_v30, %s1457_s14 }
 0x16f   : > { %v1345_v31 = vpop.permute.xlu0 %1344 }
 0x170   : > { %v1347_v32 = vunpack.i.h.bf16 %v1345_v31  ;;  %v1346_v33 = vunpack.i.l.bf16 %v1345_v31 }
 0x172   : > { %v719_v34 = vsel %vm588_vm2, %v1346_v33, %v1642_v26  ;;  %v720_v35 = vsel %vm588_vm2, %v1347_v32, %v1644_v27 }
 0x173   : > { %v801_v36 = vpop.permute.xlu0 %800  ;;  %v721_v37 = vpack.c.bf16 %v720_v35, %v719_v34 }
 0x174   : > { %1287 = vmatprep.subr.bf16.mxu1 %v801_v36 }
 0x175   : > { %1281 = vmatprep.subr.bf16.mxu0 %v721_v37  ;;  %1288 = vmatpush3.bf16.msra.mxu1 %v801_v36 }
 0x176   : > { %1282 = vmatpush3.bf16.msra.mxu0 %v721_v37 }
 0x177   : > { %1293 = vmatprep.subr.bf16.mxu0 %v1454_v7 }
 0x178   : > { %1290 = vmatmul.mubr.msk.bf16.vlgmr.msra.gmra.mrb[0].mxu1 %vm732_vm3, %v1658_v38 }
 0x179   : > { %1284 = vmatmul.mubr.msk.bf16.vlgmr.msra.gmra.mrb[4].mxu0 %vm732_vm3, %v1365_v39 }
 0x17a   : > { %1297 = vmatprep.mubr.msk.bf16.mxu0 %vm1455_vm1, %v1454_v7 }
 0x24b   : > { %v1291_v41 = vpop.f32.mrb[0].mxu1 }
 0x24c   : > { %v1285_v42 = vpop.f32.mrb[4].mxu0  ;;  %v843_v43 = vpop.f32.mrb[1].mxu1 }
 0x24d   : > { %v1301_v44 = vadd.f32 %v1285_v42, %v1219_v40  ;;  %v773_v45 = vpop.f32.mrb[5].mxu0  ;;  %v1292_v46 = vpop.f32.mrb[2].mxu1 }
 0x24e   : > { %v1303_v48 = vadd.f32 %v1219_v40, %v773_v45  ;;  %v846_v49 = vpop.f32.mrb[3].mxu1  ;;  %894 = vrot.lane.b32.xlu1 %v773_v45, %s1458_s22  ;;  %v1286_v50 = vpop.f32.mrb[6].mxu0 }
 0x24f   : > { %v1302_v51 = vadd.f32 %v1301_v44, %v1291_v41  ;;  %v1305_v52 = vadd.f32 %v1286_v50, %v1219_v40  ;;  %900 = vrot.lane.b32.xlu0 %v1286_v50, %s1458_s22  ;;  %v776_v53 = vpop.f32.mrb[7].mxu0 }
 0x250   : > { %v1304_v55 = vadd.f32 %v1303_v48, %v843_v43  ;;  %v1307_v56 = vadd.f32 %v1219_v40, %v776_v53 }
 0x251   : > { %v1234_v57 = vmul.f32 -1.442695, %v1302_v51  ;;  %v1039_v58 = vmul.f32 %v1302_v51, %v1239_v47  ;;  %v1306_v59 = vadd.f32 %v1305_v52, %v1292_v46 }
 0x252   : > { %v1232_v60 = vmul.f32 -1.442695, %v1304_v55  ;;  %v1037_v61 = vmul.f32 %v1304_v55, %v1239_v47  ;;  %v1308_v62 = vadd.f32 %v1307_v56, %v846_v49  ;;  %896 = vrot.lane.b32.xlu1 %v776_v53, %s1458_s22 }
 0x253   : > { %1366 = vpow2.f32 %v1234_v57  ;;  %v1050_v63 = vadd.f32 %v1240_v54, %v1039_v58  ;;  %v1235_v0 = vmul.f32 -1.442695, %v1306_v59  ;;  %v1040_v1 = vmul.f32 %v1306_v59, %v1239_v47 }
 0x254   : > { %1368 = vpow2.f32 %v1232_v60  ;;  %v1048_v2 = vadd.f32 %v1240_v54, %v1037_v61  ;;  %v1233_v3 = vmul.f32 -1.442695, %v1308_v62  ;;  %v1038_v4 = vmul.f32 %v1308_v62, %v1239_v47 }
 0x255   : > { %v1054_v5 = vmax.f32 %v1050_v63, 0.0  ;;  %1370 = vpow2.f32 %v1235_v0  ;;  %v1051_v6 = vadd.f32 %v1240_v54, %v1040_v1 }
 0x256   : > { %v1052_v8 = vmax.f32 %v1048_v2, 0.0  ;;  %1372 = vpow2.f32 %v1233_v3  ;;  %v1049_v11 = vadd.f32 %v1240_v54, %v1038_v4  ;;  %898 = vrot.lane.b32.xlu1 %v1285_v42, %s1458_s22 }
 0x257   : > { %v1062_v12 = vadd.f32 %v1054_v5, %v1618_v17  ;;  %v1055_v13 = vmax.f32 %v1051_v6, 0.0 }
 0x258   : > { %v1060_v16 = vadd.f32 %v1052_v8, %v1612_v14  ;;  %v1053_v19 = vmax.f32 %v1049_v11, 0.0 }
 0x259   : > { %1066 = vst.msk [vmem:[#allocation4 + $0x10] sm:$0xff] %vm588_vm2, %v1062_v12  ;;  %v1063_v21 = vadd.f32 %v1055_v13, %v1620_v18 }
 0x25a   : > { %1064 = vst.msk [vmem:[#allocation4] sm:$0xff] %vm588_vm2, %v1060_v16  ;;  %v1061_v22 = vadd.f32 %v1053_v19, %v1614_v15 }
 0x25b   : > { %1067 = vst.msk [vmem:[#allocation4 + $0x18] sm:$0xff] %vm588_vm2, %v1063_v21 }
 0x25c   : > { %1065 = vst.msk [vmem:[#allocation4 + $0x8] sm:$0xff] %vm588_vm2, %v1061_v22 }
 0x25d   : > { %v1367_v23 = vpop.eup %1366 }
 0x25e   : > { %v1369_v24 = vpop.eup %1368  ;;  %v880_v25 = vadd.f32 1.0, %v1367_v23 }
 0x25f   : > { %v1371_v17 = vpop.eup %1370  ;;  %v878_v28 = vadd.f32 1.0, %v1369_v24 }
 0x260   : > { %v1373_v29 = vpop.eup %1372  ;;  %1374 = vrcp.f32 %v880_v25  ;;  %v881_v14 = vadd.f32 1.0, %v1371_v17 }
 0x261   : > { %1376 = vrcp.f32 %v878_v28  ;;  %v879_v30 = vadd.f32 1.0, %v1373_v29 }
 0x262   : > { %1378 = vrcp.f32 %v881_v14 }
 0x263   : > { %1380 = vrcp.f32 %v879_v30 }
 0x26a   : > { %v1375_v18 = vpop.eup %1374 }
 0x26b   : > { %v1377_v31 = vpop.eup %1376 }
 0x26c   : > { %v1379_v32 = vpop.eup %1378 }
 0x26d   : > { %v1381_v15 = vpop.eup %1380  ;;  %v1348_v33 = vpack.i.bf16 %v1379_v32, %v1375_v18 }
 0x26e   : > { %v1353_v34 = vpack.i.bf16 %v1381_v15, %v1377_v31 }
 0x26f   : > { %1349 = vrot.lane.b32.xlu1 %v1348_v33, %s1457_s14 }
 0x270   : > { %1354 = vrot.lane.b32.xlu0 %v1353_v34, %s1457_s14 }
 0x28e   : > { %934 = vxpose.xlu0.c.b16.start [1/2] (short) (narrow) %v1629_v20, 16 }
 0x292   : > { %935 = vxpose.xlu0.c.b16.end [2/2] (short) (narrow) %v1658_v38, 16 }
 0x2c0   : > { %v895_v35 = vpop.permute.xlu1 %894 }
 0x2c1   : > { %v901_v39 = vpop.permute.xlu0 %900  ;;  %v906_v41 = vmul.f32 %v1377_v31, %v895_v35 }
 0x2c2   : > { %v909_v48 = vmul.f32 %v1379_v32, %v901_v39 }
 0x2c4   : > { %v897_v36 = vpop.permute.xlu1 %896 }
 0x2c5   : > { %v907_v42 = vmul.f32 %v1381_v15, %v897_v36 }
 0x2c8   : > { %v899_v37 = vpop.permute.xlu1 %898 }
 0x2c9   : > { %v908_v49 = vmul.f32 %v1375_v18, %v899_v37 }
 0x2e1   : > { %v1350_v40 = vpop.permute.xlu1 %1349 }
 0x2e2   : > { %v1355_v43 = vpop.permute.xlu0 %1354  ;;  %v1352_v44 = vunpack.i.h.bf16 %v1350_v40  ;;  %v1351_v45 = vunpack.i.l.bf16 %v1350_v40 }
 0x2e3   : > { %v1357_v46 = vunpack.i.h.bf16 %v1355_v43  ;;  %v1356_v47 = vunpack.i.l.bf16 %v1355_v43 }
 0x2e4   : > { %v929_v38 = vsel %vm588_vm2, %v909_v48, %v1352_v44  ;;  %v928_v52 = vsel %vm588_vm2, %v908_v49, %v1351_v45 }
 0x2e5   : > { %v926_v50 = vsel %vm588_vm2, %v906_v41, %v1356_v47  ;;  %v927_v20 = vsel %vm588_vm2, %v907_v42, %v1357_v46  ;;  %v931_v53 = vpack.c.bf16 %v929_v38, %v928_v52 }
 0x2e6   : > { %v930_v51 = vpack.c.bf16 %v927_v20, %v926_v50 }
 0x2e8   : > { %1294 = vmatpush3.bf16.msra.mxu0 %v930_v51 }
 0x2e9   : > { %1295 = vmatprep.subr.bf16.mxu0 %v1454_v7 }
 0x2ec   : > { %1296 = vmatpush3.bf16.msra.mxu0 %v931_v53 }
 0x2f4   : > { %v942_v54 = vpop.trf.xlu0 }
 0x2f5   : > { %1298 = vmatmul.mubr.msk.bf16.vlgmr.msra.gmra.mrb[8].mxu0 %vm588_vm2, %v942_v54 }
 0x3c8   : > { %v987_v55 = vpop.f32.mrb[8].mxu0 }
 0x3c9   : > { %v994_v56 = vadd.f32 1e-06, %v987_v55  ;;  %v1299_v57 = vpop.f32.mrb[9].mxu0 }
 0x3ca   : > { %v990_v58 = vpop.f32.mrb[10].mxu0 }
 0x3cb   : > { %1382 = vrcp.f32 %v994_v56  ;;  %v995_v59 = vadd.f32 1e-06, %v990_v58  ;;  %v1300_v60 = vpop.f32.mrb[11].mxu0 }
 0x3cd   : > { %1384 = vrcp.f32 %v995_v59 }
 0x3d5   : > { %v1383_v61 = vpop.eup %1382 }
 0x3d6   : > { %1000 = vrot.lane.b32.xlu1 %v1383_v61, %s1458_s22 }
 0x3d7   : > { %v1385_v62 = vpop.eup %1384 }
 0x3da   : > { %1002 = vrot.lane.b32.xlu1 %v1385_v62, %s1458_s22 }
 0x3db   : > { %1399 = shalt.err (!%p1396_p12)
}
 0x3dc   : > { %s1801_s29 = sld [smem:[#allocation11_spill]] }
 0x3e2   : > { %s1400_s15 = scalar_lea.hbm %s1801_s29, 512 }
 0x3e3   : > { %p1401_p13 = scmp.ne.s32.totalorder %s1801_s29, %s1400_s15  ;;  %p1406_p2 = scmp.lt.u32.totalorder %s1400_s15, %s1801_s29 }
 0x3e5   : > { %p1402_p0 = pnand %p1401_p13, %p1321_p5 }
 0x3e7   : > { %p1403_p1 = pneg %p1402_p0 }
 0x3e9   : > { %p1408_p3 = pnand %p1406_p2, %p1403_p1 }
 0x3eb   : > { %1411 = shalt.err (!%p1408_p3)
}
 0x3ec   : > { %s1460_s21 = smov 128   ;;  %s1461_s25 = smov 8   ;;  %v1237_v0 = vld [vmem:[%s520_s12] ss:$0 sm:$0xff] }
 0x3ed   : > { %1316 = dma.vmem_to_hbm [thread:$0]  (%p1321_p5), %s1088_s28, 512, %s1801_s29, [#allocation5], %s1460_s21, %s1460_s21, %s1461_s25  }
 0x3ee   : > { %v1238_v2 = vld [vmem:[%s523_s30] ss:$0 sm:$0xff]  ;;  %s1462_s12 = smov [#allocation2]  }
 0x3ef   : > { %s1074_s28 = sshll.u32 %s1462_s12, 4  ;;  %s1075_s28 = int_to_ptr.vmem [resolvable:$true] %s1074_s28 }
 0x3f0   : > { %s1412_s27 = scalar_lea.vmem %s1075_s28, 256  ;;  %p1419_p8 = scmp.lt.s32.totalorder %s1075_s28, %s1075_s28 }
 0x3f1   : > { %p1413_p4 = scmp.ne.s32.totalorder %s1075_s28, %s1412_s27  ;;  %p1420_p9 = scmp.lt.s32.totalorder %s1412_s27, %s1412_s27 }
 0x3f3   : > { %p1414_p6 = pnand %p1413_p4, %p1321_p5  ;;  %p1421_p10 = por %p1420_p9, %p1419_p8 }
 0x3f5   : > { %p1415_p7 = pneg %p1414_p6 }
 0x3f7   : > { %p1422_p11 = pnand %p1421_p10, %p1415_p7 }
 0x448   : > { %v1001_v7 = vpop.permute.xlu1 %1000 }
 0x449   : > { %v1006_v63 = vmul.f32 %v1001_v7, %v987_v55 }
 0x44b   : > { %v1008_v1 = vadd.f32 %v1006_v63, %v1642_v26 }
 0x44c   : > { %v1003_v3 = vpop.permute.xlu1 %1002 }
 0x44d   : > { %v1017_v4 = vmul.f32 %v1237_v0, %v1008_v1  ;;  %v1007_v5 = vmul.f32 %v1003_v3, %v990_v58 }
 0x44f   : > { %v1026_v6 = vadd.f32 %v1238_v2, %v1017_v4  ;;  %v1009_v8 = vadd.f32 %v1007_v5, %v1644_v27 }
 0x451   : > { %v1028_v11 = vmax.f32 %v1026_v6, 0.0  ;;  %v1018_v12 = vmul.f32 %v1237_v0, %v1009_v8 }
 0x453   : > { %v1056_v13 = vadd.f32 %v1028_v11, %v1602_v9  ;;  %v1027_v16 = vadd.f32 %v1238_v2, %v1018_v12 }
 0x455   : > { %1058 = vst.msk [vmem:[#allocation2] sm:$0xff] %vm588_vm2, %v1056_v13  ;;  %v1029_v26 = vmax.f32 %v1027_v16, 0.0 }
 0x457   : > { %v1057_v19 = vadd.f32 %v1029_v26, %v1604_v10 }
 0x459   : > { %1059 = vst.msk [vmem:[#allocation2 + $0x8] sm:$0xff] %vm588_vm2, %v1057_v19 }
 0x45a   : > { %1425 = shalt.err (!%p1422_p11)
}
 0x45b   : > { %s1802_s15 = sld [smem:[#allocation10_spill]] }
 0x461   : > { %s1426_s18 = scalar_lea.hbm %s1802_s15, 256 }
 0x462   : > { %p1427_p12 = scmp.ne.s32.totalorder %s1802_s15, %s1426_s18  ;;  %p1432_p1 = scmp.lt.u32.totalorder %s1426_s18, %s1802_s15 }
 0x464   : > { %p1428_p13 = pnand %p1427_p12, %p1321_p5 }
 0x466   : > { %p1429_p0 = pneg %p1428_p13 }
 0x468   : > { %p1434_p2 = pnand %p1432_p1, %p1429_p0 }
 0x46a   : > { %1437 = shalt.err (!%p1434_p2)
}
 0x46b   : > { %1314 = dma.vmem_to_hbm [thread:$0]  (%p1321_p5), %s1075_s28, 256, %s1802_s15, [#allocation3], %s1460_s21, %s1460_s21, %s1461_s25  }
 0x46c   : > { %1443 = dma.done.wait (%p1321_p5), [#allocation3], 256  }
 0x46d   : > { %1445 = vsyncadd (%p1321_p5), [#allocation3], 4294967040 }
 0x46e   : > { %1447 = dma.done.wait (%p1321_p5), [#allocation5], 512  }
 0x46f   : > { %1449 = vsyncadd (%p1321_p5), [#allocation5], 4294966784 }
 0x470 PF: > { %s1803_s16 = sld [smem:[#allocation8_spill]] }
 0x476   : > { %s26_s25 = sadd.s32 1, %s1803_s16  }
 0x477   : > { %p23_p3 = scmp.ge.s32.totalorder %s26_s25, 4  }
 0x479   :  { %25 = sbr.rel (!%p23_p3) target bundleno = 6 (0x6), region = 128 }
 0x480   :  { %1107 = vsyncpa [#allocation3], 1 }
 0x481   :  { %1109 = vsyncpa [#allocation3 + $0x1], 1 }
 0x482   :  { %1110 = vsyncpa [#allocation5], 1 }

</bundles_post_ra>
